<compile_context>
chip_gen: v7x
topology: tpu7x:2x2x1
jax: 0.10.0
libtpu: 0.0.40
codegen_flags: <defaults>
</compile_context>

<pallas_src>
import math
from functools import partial

import jax
import jax.numpy as jnp
from jax import lax
from jax.experimental import pallas as pl
from jax.experimental.pallas import tpu as pltpu


_CHUNK = 512  # lanes per inner compute chunk: (32, 512) f32 activation = 16 vregs


def _round_up(x: int, m: int) -> int:
    return ((x + m - 1) // m) * m


def _gelu(x, approximate: bool):
    if approximate:
        # tanh form -> EUP (frees the 4 VALU slots); ~1e-3 deviation vs exact erf.
        c = math.sqrt(2.0 / math.pi)
        return 0.5 * x * (1.0 + jnp.tanh(c * (x + 0.044715 * x * x * x)))
    # PyTorch nn.GELU() default: exact erf formulation.
    return 0.5 * x * (1.0 + lax.erf(x * (1.0 / math.sqrt(2.0))))


def _make_mlp_kernel(*, n_layers, d_out_pad, b_tile, chunk, approximate_gelu):
    """All shapes static.  Batch lives on the lane axis; features on sublanes."""
    # Static chunk schedule over the lane (batch) axis of one tile.
    chunks = [(off, min(chunk, b_tile - off)) for off in range(0, b_tile, chunk)]

    def kernel(xT_ref, w_ref, b_ref, oT_ref):
        # Hoist resident parameter loads out of the chunk loop.
        ws = [w_ref[l] for l in range(n_layers)]        # (d_pad, d_pad) each, zero-padded
        bs = [b_ref[l] for l in range(n_layers)]        # (d_pad, 1)     each, zero-padded
        for off, cs in chunks:
            sl = pl.ds(off, cs)
            h = xT_ref[:, sl]                           # (d_pad, cs) f32
            for l in range(n_layers):
                h = jnp.dot(ws[l], h, preferred_element_type=jnp.float32) + bs[l]
                if l < n_layers - 1:
                    h = _gelu(h, approximate_gelu)      # Dropout is identity in eval mode
            oT_ref[:, sl] = h[:d_out_pad, :].astype(oT_ref.dtype)

    return kernel


def pack_params(params):
    """Pack (W, b) layers once into two zero-padded f32 stacks (done at init, reused).

    params: list of (W, b) with W:(fan_in, fan_out), b:(1, fan_out).
    Returns (w_stack (L, d_pad, d_pad) holding W^T, b_stack (L, d_pad, 1), d_out).
    """
    n_layers = len(params)
    d_out = params[-1][0].shape[1]
    d_max = max(max(w.shape) for w, _ in params)
    d_pad = _round_up(max(d_max, 8), 8)
    w_stack = jnp.zeros((n_layers, d_pad, d_pad), jnp.float32)
    b_stack = jnp.zeros((n_layers, d_pad, 1), jnp.float32)
    for l, (w, b) in enumerate(params):
        fan_in, fan_out = w.shape
        w_stack = w_stack.at[l, :fan_out, :fan_in].set(jnp.asarray(w, jnp.float32).T)
        b_stack = b_stack.at[l, :fan_out, :].set(jnp.asarray(b, jnp.float32).reshape(fan_out, 1))
    return w_stack, b_stack, d_out


@partial(jax.jit, static_argnames=("d_out", "b_tile", "approximate_gelu"))
def neural_network_forward(x, w_stack, b_stack, *, d_out, b_tile=None, approximate_gelu=False):
    """x: (B, size_in) f32 -> (B, size_out) f32, eval-mode semantics of the PyTorch module."""
    x = jnp.asarray(x, jnp.float32)
    B, d_in = x.shape
    n_layers, d_pad, _ = w_stack.shape
    d_out_pad = _round_up(d_out, 8)

    # ---- batch tiling (batch on lanes -> multiples of 128) --------------------------
    B_128 = _round_up(max(B, 1), 128)
    if b_tile is None:
        if B_128 <= 128:
            bt = 128
        else:
            # >= 2 tiles so both v7x TensorCores get work; cap tile at 2048 lanes.
            bt = min(2048, max(128, _round_up(B_128 // 2, 128)))
    else:
        bt = _round_up(b_tile, 128)
    B_pad = _round_up(B_128, bt)
    n_tiles = B_pad // bt

    # ---- fused transpose+pad of the input (single XLA op under jit) -----------------
    # Padded feature rows are zero; padded weight cols/rows and biases are zero, and
    # gelu(0)=0, so the full (d_pad x d_pad) matmuls are bit-identical to the sliced math.
    xT = jnp.pad(x.T, ((0, d_pad - d_in), (0, B_pad - B)))

    kernel = _make_mlp_kernel(
        n_layers=n_layers, d_out_pad=d_out_pad, b_tile=bt, chunk=_CHUNK,
        approximate_gelu=approximate_gelu)

    oT = pl.pallas_call(
        kernel,
        out_shape=jax.ShapeDtypeStruct((d_out_pad, B_pad), jnp.float32),
        grid=(n_tiles,),
        in_specs=[
            pl.BlockSpec((d_pad, bt), lambda i: (0, i)),                   # x^T batch tile
            pl.BlockSpec((n_layers, d_pad, d_pad), lambda i: (0, 0, 0)),   # packed weights (resident)
            pl.BlockSpec((n_layers, d_pad, 1), lambda i: (0, 0, 0)),       # packed biases  (resident)
        ],
        out_specs=pl.BlockSpec((d_out_pad, bt), lambda i: (0, i)),
        compiler_params=pltpu.CompilerParams(dimension_semantics=("parallel",)),
    )(xT, w_stack, b_stack)

    return oT[:d_out, :B].T


def init_params(key, layer_node_count):
    """Deterministic init mimicking torch.nn.Linear default (uniform +-1/sqrt(fan_in))."""
    params = []
    first_and_hidden = layer_node_count[:-1]
    dims = [(first_and_hidden[i], first_and_hidden[i + 1]) for i in range(len(first_and_hidden) - 1)]
    dims.append((first_and_hidden[-1], layer_node_count[-1]))
    for fan_in, fan_out in dims:
        key, kw, kb = jax.random.split(key, 3)
        bound = 1.0 / math.sqrt(fan_in)
        w = jax.random.uniform(kw, (fan_in, fan_out), jnp.float32, -bound, bound)
        b = jax.random.uniform(kb, (1, fan_out), jnp.float32, -bound, bound)
        params.append((w, b))
    return params


def reference_forward(x, params, approximate_gelu=False):
    h = jnp.asarray(x, jnp.float32)
    for i, (w, b) in enumerate(params):
        h = h @ w + b
        if i < len(params) - 1:
            h = _gelu(h, approximate_gelu)
    return h


if __name__ == "__main__":
    # Equivalent to NeuralNetworkModel(layer_node_count=(8, 32, 32, 8),
    #                                  dropout_probability=0.1, use_batch_norm=False)
    # in eval() mode (dropout identity; BatchNorm1d never added to the Sequential).
    layer_node_count = (8, 32, 32, 8)
    batch = 2

    key = jax.random.PRNGKey(0)
    key, kx = jax.random.split(key)
    x = jax.random.normal(kx, (batch, layer_node_count[0]), jnp.float32)
    params = init_params(key, layer_node_count)

    # Pack once at init (hoisted out of the per-call path), reuse for every forward.
    w_stack, b_stack, d_out = pack_params(params)

    out = jax.block_until_ready(neural_network_forward(x, w_stack, b_stack, d_out=d_out))
    ref = reference_forward(x, params)
    assert out.shape == (batch, d_out)
    assert jnp.allclose(out, ref, atol=1e-5, rtol=1e-5)

    # Larger, non-aligned batch: exercises the >=2-tile grid (v7x megacore) + padding path.
    xb = jax.random.normal(jax.random.PRNGKey(42), (300, layer_node_count[0]), jnp.float32)
    outb = jax.block_until_ready(neural_network_forward(xb, w_stack, b_stack, d_out=d_out))
    refb = reference_forward(xb, params)
    assert outb.shape == (300, d_out)
    assert jnp.allclose(outb, refb, atol=1e-5, rtol=1e-5)

    # Optional EUP-friendly tanh-GELU path (perf); checked against a tanh-GELU reference.
    outa = jax.block_until_ready(
        neural_network_forward(xb, w_stack, b_stack, d_out=d_out, approximate_gelu=True))
    refa = reference_forward(xb, params, approximate_gelu=True)
    assert jnp.allclose(outa, refa, atol=1e-5, rtol=1e-5)

    # TODO(synk): training utilities (Adam, HuberLoss, ReduceLROnPlateau, train_me) are
    # out of scope for a forward-pass kernel.
    print("KERNEL_OK")
</pallas_src>

<mosaic_0001>
module attributes {stable_mosaic.version = 11 : i64} {
  func.func @kernel(%arg0: i32, %arg1: memref<32x128xf32, #tpu.memory_space<vmem>>, %arg2: memref<3x32x32xf32, #tpu.memory_space<vmem>>, %arg3: memref<3x32x1xf32, #tpu.memory_space<vmem>>, %arg4: memref<8x128xf32, #tpu.memory_space<vmem>>) attributes {dimension_semantics = [#tpu.dimension_semantics<parallel>], iteration_bounds = array<i64: 1>, scalar_prefetch = 0 : i64, scratch_operands = 0 : i64, tpu.core_type = #tpu.core_type<tc>, window_params = [{transform_indices = @transform_0, window_bounds = array<i64: 32, 128>}, {pipeline_mode = #tpu.pipeline_mode<synchronous>, transform_indices = @transform_1, window_bounds = array<i64: 3, 32, 32>}, {pipeline_mode = #tpu.pipeline_mode<synchronous>, transform_indices = @transform_2, window_bounds = array<i64: 3, 32, 1>}, {transform_indices = @transform_3, window_bounds = array<i64: 8, 128>}]} {
    %c0 = arith.constant 0 : index
    %c0_0 = arith.constant 0 : index
    %c0_1 = arith.constant 0 : index
    %0 = vector.load %arg2[%c0, %c0_0, %c0_1] : memref<3x32x32xf32, #tpu.memory_space<vmem>>, vector<1x32x32xf32>
    %1 = vector.shape_cast %0 : vector<1x32x32xf32> to vector<32x32xf32>
    %c1 = arith.constant 1 : index
    %c0_2 = arith.constant 0 : index
    %c0_3 = arith.constant 0 : index
    %2 = vector.load %arg2[%c1, %c0_2, %c0_3] : memref<3x32x32xf32, #tpu.memory_space<vmem>>, vector<1x32x32xf32>
    %3 = vector.shape_cast %2 : vector<1x32x32xf32> to vector<32x32xf32>
    %c2 = arith.constant 2 : index
    %c0_4 = arith.constant 0 : index
    %c0_5 = arith.constant 0 : index
    %4 = vector.load %arg2[%c2, %c0_4, %c0_5] : memref<3x32x32xf32, #tpu.memory_space<vmem>>, vector<1x32x32xf32>
    %5 = vector.shape_cast %4 : vector<1x32x32xf32> to vector<32x32xf32>
    %c0_6 = arith.constant 0 : index
    %c0_7 = arith.constant 0 : index
    %c0_8 = arith.constant 0 : index
    %6 = vector.load %arg3[%c0_6, %c0_7, %c0_8] : memref<3x32x1xf32, #tpu.memory_space<vmem>>, vector<1x32x1xf32>
    %7 = vector.shape_cast %6 : vector<1x32x1xf32> to vector<32x1xf32>
    %c1_9 = arith.constant 1 : index
    %c0_10 = arith.constant 0 : index
    %c0_11 = arith.constant 0 : index
    %8 = vector.load %arg3[%c1_9, %c0_10, %c0_11] : memref<3x32x1xf32, #tpu.memory_space<vmem>>, vector<1x32x1xf32>
    %9 = vector.shape_cast %8 : vector<1x32x1xf32> to vector<32x1xf32>
    %c2_12 = arith.constant 2 : index
    %c0_13 = arith.constant 0 : index
    %c0_14 = arith.constant 0 : index
    %10 = vector.load %arg3[%c2_12, %c0_13, %c0_14] : memref<3x32x1xf32, #tpu.memory_space<vmem>>, vector<1x32x1xf32>
    %11 = vector.shape_cast %10 : vector<1x32x1xf32> to vector<32x1xf32>
    %c0_15 = arith.constant 0 : index
    %c0_16 = arith.constant 0 : index
    %12 = vector.load %arg1[%c0_15, %c0_16] : memref<32x128xf32, #tpu.memory_space<vmem>>, vector<32x128xf32>
    %cst = arith.constant dense<0.000000e+00> : vector<32x128xf32>
    %13 = tpu.matmul %1, %12, %cst {dimension_numbers = #tpu.dot_dimension_numbers<[1], [0], [0], [1], [0, 0, 1, 1], [], []>} : vector<32x32xf32>, vector<32x128xf32>, vector<32x128xf32> -> vector<32x128xf32>
    %14 = vector.broadcast %7 : vector<32x1xf32> to vector<32x128xf32>
    %15 = arith.addf %13, %14 : vector<32x128xf32>
    %cst_17 = arith.constant 5.000000e-01 : f32
    %16 = vector.broadcast %cst_17 : f32 to vector<32x128xf32>
    %17 = arith.mulf %16, %15 : vector<32x128xf32>
    %cst_18 = arith.constant 0.707106769 : f32
    %18 = vector.broadcast %cst_18 : f32 to vector<32x128xf32>
    %19 = arith.mulf %15, %18 : vector<32x128xf32>
    %20 = math.erf %19 : vector<32x128xf32>
    %cst_19 = arith.constant 1.000000e+00 : f32
    %21 = vector.broadcast %cst_19 : f32 to vector<32x128xf32>
    %22 = arith.addf %21, %20 : vector<32x128xf32>
    %23 = arith.mulf %17, %22 : vector<32x128xf32>
    %cst_20 = arith.constant dense<0.000000e+00> : vector<32x128xf32>
    %24 = tpu.matmul %3, %23, %cst_20 {dimension_numbers = #tpu.dot_dimension_numbers<[1], [0], [0], [1], [0, 0, 1, 1], [], []>} : vector<32x32xf32>, vector<32x128xf32>, vector<32x128xf32> -> vector<32x128xf32>
    %25 = vector.broadcast %9 : vector<32x1xf32> to vector<32x128xf32>
    %26 = arith.addf %24, %25 : vector<32x128xf32>
    %cst_21 = arith.constant 5.000000e-01 : f32
    %27 = vector.broadcast %cst_21 : f32 to vector<32x128xf32>
    %28 = arith.mulf %27, %26 : vector<32x128xf32>
    %cst_22 = arith.constant 0.707106769 : f32
    %29 = vector.broadcast %cst_22 : f32 to vector<32x128xf32>
    %30 = arith.mulf %26, %29 : vector<32x128xf32>
    %31 = math.erf %30 : vector<32x128xf32>
    %cst_23 = arith.constant 1.000000e+00 : f32
    %32 = vector.broadcast %cst_23 : f32 to vector<32x128xf32>
    %33 = arith.addf %32, %31 : vector<32x128xf32>
    %34 = arith.mulf %28, %33 : vector<32x128xf32>
    %cst_24 = arith.constant dense<0.000000e+00> : vector<32x128xf32>
    %35 = tpu.matmul %5, %34, %cst_24 {dimension_numbers = #tpu.dot_dimension_numbers<[1], [0], [0], [1], [0, 0, 1, 1], [], []>} : vector<32x32xf32>, vector<32x128xf32>, vector<32x128xf32> -> vector<32x128xf32>
    %36 = vector.broadcast %11 : vector<32x1xf32> to vector<32x128xf32>
    %37 = arith.addf %35, %36 : vector<32x128xf32>
    %38 = vector.extract_strided_slice %37 {offsets = [0, 0], sizes = [8, 128], strides = [1, 1]} : vector<32x128xf32> to vector<8x128xf32>
    %c0_25 = arith.constant 0 : index
    %c0_26 = arith.constant 0 : index
    %39 = vector.load %arg4[%c0_25, %c0_26] : memref<8x128xf32, #tpu.memory_space<vmem>>, vector<8x128xf32>
    tpu.vector_store %arg4[%c0_25, %c0_26], %38 {strides = array<i32>} : memref<8x128xf32, #tpu.memory_space<vmem>>, vector<8x128xf32>,
    return
  }
  func.func @transform_0(%arg0: i32) -> (i32, i32) {
    %c0_i32 = arith.constant 0 : i32
    %c0_i32_0 = arith.constant 0 : i32
    return %c0_i32, %arg0 : i32, i32
  }
  func.func @transform_1(%arg0: i32) -> (i32, i32, i32) {
    %c0_i32 = arith.constant 0 : i32
    %c0_i32_0 = arith.constant 0 : i32
    %c0_i32_1 = arith.constant 0 : i32
    %c0_i32_2 = arith.constant 0 : i32
    return %c0_i32, %c0_i32_0, %c0_i32_1 : i32, i32, i32
  }
  func.func @transform_2(%arg0: i32) -> (i32, i32, i32) {
    %c0_i32 = arith.constant 0 : i32
    %c0_i32_0 = arith.constant 0 : i32
    %c0_i32_1 = arith.constant 0 : i32
    %c0_i32_2 = arith.constant 0 : i32
    return %c0_i32, %c0_i32_0, %c0_i32_1 : i32, i32, i32
  }
  func.func @transform_3(%arg0: i32) -> (i32, i32) {
    %c0_i32 = arith.constant 0 : i32
    %c0_i32_0 = arith.constant 0 : i32
    return %c0_i32, %arg0 : i32, i32
  }
}

</mosaic_0001>

<bundles_post_ra>
// kernel: neural_network_forward.1
= control target key start
LH: loop header
LB: loop body
LE: loop exit
PB: predicated region body
PF: predicated region fallthrough
CT: control target
= control target key end

     0   :  { %vm66_vm0 = vcmask 261120   ;;  %v578_v3 = vmov 0   ;;  %s689_s0 = inlined_call_operand.vmem [shape: f32[32,128], index: 0, kind: input, shape index: {}]   ;;  %s690_s1 = inlined_call_operand.vmem [shape: f32[3,32,32], index: 1, kind: input, shape index: {}]   ;;  %s691_s2 = inlined_call_operand.vmem [shape: f32[3,32,1], index: 2, kind: input, shape index: {}]   ;;  %s692_s3 = inlined_call_operand.vmem [shape: f32[8,128], index: 3, kind: output, shape index: {}]  }
   0x1   :  { %v42_v0 = vld [vmem:[%s689_s0] sm:$0xff]  ;;  %v43_v1 = vld [vmem:[%s689_s0 + $0x8] sm:$0xff]  ;;  %v44_v2 = vld [vmem:[%s689_s0 + $0x10] sm:$0xff]  ;;  %560 = vset.pattern.permute.xlu0 %v578_v3  ;;  %561 = vset.pattern.permute.xlu1 %v578_v3 }
   0x2   :  { %v531_v4 = vpack.c.bf16 %v43_v1, %v42_v0  ;;  %v45_v5 = vld [vmem:[%s689_s0 + $0x18] sm:$0xff]  ;;  %v14_v6 = vld [vmem:[%s690_s1] sm:$0xff]  ;;  %v30_v9 = vld [vmem:[%s691_s2 + $0x10] sm:$0xff] }
   0x3   :  { %v535_v7 = vpack.c.bf16 %v45_v5, %v44_v2  ;;  %497 = vmatprep.mubr.msk.f32.mxu0 %vm66_vm0, %v14_v6  ;;  %v28_v8 = vld [vmem:[%s691_s2] sm:$0xff]  ;;  %v29_v10 = vld [vmem:[%s691_s2 + $0x8] sm:$0xff]  ;;  %58 = vperm.xlu1 %561, %v30_v9   ;;  %v31_v11 = vld [vmem:[%s691_s2 + $0x18] sm:$0xff] }
   0x4   :  { %532 = vmatprep.subr.bf16.mxu0 %v531_v4  ;;  %48 = vperm.xlu0 %560, %v28_v8   ;;  %v15_v12 = vld [vmem:[%s690_s1 + $0x8] sm:$0xff]  ;;  %v445_v13 = vld [vmem:[%s691_s2 + $0x20] sm:$0xff]  ;;  %v16_v14 = vld [vmem:[%s690_s1 + $0x10] sm:$0xff] }
   0x5   :  { %534 = vmatpush3.bf16.msra.mxu0 %v531_v4  ;;  %v446_v15 = vld [vmem:[%s691_s2 + $0x28] sm:$0xff]  ;;  %v17_v16 = vld [vmem:[%s690_s1 + $0x18] sm:$0xff]  ;;  %v447_v17 = vld [vmem:[%s691_s2 + $0x30] sm:$0xff] }
   0x6   :  { %536 = vmatprep.subr.bf16.mxu0 %v535_v7  ;;  %v448_v18 = vld [vmem:[%s691_s2 + $0x38] sm:$0xff]  ;;  %v449_v19 = vld [vmem:[%s691_s2 + $0x40] sm:$0xff]  ;;  %v438_v55 = vld [vmem:[%s690_s1 + $0x28] sm:$0xff] }
   0x7   :  { %63 = vperm.xlu1 %561, %v31_v11   ;;  %v437_v20 = vld [vmem:[%s690_s1 + $0x20] sm:$0xff]  ;;  %v439_v56 = vld [vmem:[%s690_s1 + $0x30] sm:$0xff]  ;;  %v440_v57 = vld [vmem:[%s690_s1 + $0x38] sm:$0xff] }
   0x8   :  { %53 = vperm.xlu0 %560, %v29_v10   ;;  %511 = vmatprep.mubr.msk.f32.mxu1 %vm66_vm0, %v437_v20  ;;  %v441_v58 = vld [vmem:[%s690_s1 + $0x40] sm:$0xff]  ;;  %v443_v59 = vld [vmem:[%s690_s1 + $0x50] sm:$0xff] }
   0x9   :  { %538 = vmatpush3.bf16.msra.mxu0 %v535_v7 }
   0xb   :  { %191 = vperm.xlu1 %561, %v446_v15  }
   0xc   :  { %498 = vmatmul.mubr.msk.f32.vlgmr.msra.gmra.mrb[0].mxu0 %vm66_vm0, %v15_v12  ;;  %186 = vperm.xlu0 %560, %v445_v13  }
   0xd   :  { %500 = vmatprep.mubr.msk.f32.mxu0 %vm66_vm0, %v16_v14 }
   0xf   :  { %201 = vperm.xlu1 %561, %v448_v18  }
  0x10   :  { %501 = vmatmul.mubr.msk.f32.gmra.mrb[2].mxu0 %vm66_vm0, %v17_v16  ;;  %196 = vperm.xlu0 %560, %v447_v17  }
  0x11   :  { %525 = vmatprep.mubr.msk.f32.mxu0 %vm66_vm0, %v441_v58 }
  0x14   :  { %323 = vperm.xlu0 %560, %v449_v19  }
  0x82   :  { %v59_v22 = vpop.permute.xlu1 %58 }
  0x83   :  { %v49_v21 = vpop.permute.xlu0 %48 }
  0x86   :  { %v64_v29 = vpop.permute.xlu1 %63 }
  0x87   :  { %v54_v23 = vpop.permute.xlu0 %53 }
  0x8a   :  { %v192_v60 = vpop.permute.xlu1 %191 }
  0x8b   :  { %v187_v61 = vpop.permute.xlu0 %186 }
  0x8e   :  { %v202_v3 = vpop.permute.xlu1 %201 }
  0x8f   :  { %v197_v6 = vpop.permute.xlu0 %196 }
  0xdf   :  { %v499_v24 = vpop.f32.mrb[0].mxu0 }
  0xe0   :  { %v151_v25 = vadd.f32 %v499_v24, %v54_v23  ;;  %v145_v26 = vpop.f32.mrb[1].mxu0 }
  0xe1   :  { %v146_v27 = vadd.f32 %v145_v26, %v49_v21 }
  0xe2   :  { %v169_v28 = vmul.f32 0.70710677, %v151_v25  ;;  %v165_v39 = vmul.f32 0.5, %v151_v25 }
  0xe3   :  { %v168_v30 = vmul.f32 0.70710677, %v146_v27  ;;  %v502_v31 = vpop.f32.mrb[2].mxu0  ;;  %v164_v41 = vmul.f32 0.5, %v146_v27 }
  0xe4   :  { %562 = verf.f32 %v169_v28  ;;  %v161_v32 = vadd.f32 %v502_v31, %v64_v29  ;;  %v155_v33 = vpop.f32.mrb[3].mxu0  ;;  %v444_v31 = vld [vmem:[%s690_s1 + $0x58] sm:$0xff] }
  0xe5   :  { %564 = verf.f32 %v168_v30  ;;  %v156_v34 = vadd.f32 %v155_v33, %v59_v22  ;;  %v442_v30 = vld [vmem:[%s690_s1 + $0x48] sm:$0xff] }
  0xe6   :  { %v171_v35 = vmul.f32 0.70710677, %v161_v32  ;;  %v167_v47 = vmul.f32 0.5, %v161_v32  ;;  %v324_v32 = vpop.permute.xlu0 %323 }
  0xe7   :  { %v170_v36 = vmul.f32 0.70710677, %v156_v34  ;;  %v166_v49 = vmul.f32 0.5, %v156_v34 }
  0xe8   :  { %566 = verf.f32 %v171_v35 }
  0xe9   :  { %568 = verf.f32 %v170_v36 }
  0xee   :  { %v563_v37 = vpop.eup %562 }
  0xef   :  { %v565_v38 = vpop.eup %564  ;;  %v177_v40 = vadd.f32 1.0, %v563_v37 }
  0xf0   :  { %v176_v42 = vadd.f32 1.0, %v565_v38 }
  0xf1   :  { %v181_v43 = vmul.f32 %v177_v40, %v165_v39 }
  0xf2   :  { %v567_v44 = vpop.eup %566  ;;  %v180_v45 = vmul.f32 %v176_v42, %v164_v41 }
  0xf3   :  { %v569_v46 = vpop.eup %568  ;;  %v179_v48 = vadd.f32 1.0, %v567_v44 }
  0xf4   :  { %v178_v50 = vadd.f32 1.0, %v569_v46  ;;  %v539_v51 = vpack.c.bf16 %v181_v43, %v180_v45 }
  0xf5   :  { %v183_v52 = vmul.f32 %v179_v48, %v167_v47 }
  0xf6   :  { %v182_v53 = vmul.f32 %v178_v50, %v166_v49  ;;  %540 = vmatprep.subr.bf16.mxu1 %v539_v51 }
  0xf7   :  { %542 = vmatpush3.bf16.msra.mxu1 %v539_v51 }
  0xf8   :  { %v543_v54 = vpack.c.bf16 %v183_v52, %v182_v53 }
  0xfa   :  { %544 = vmatprep.subr.bf16.mxu1 %v543_v54 }
  0xfb   :  { %546 = vmatpush3.bf16.msra.mxu1 %v543_v54 }
  0xfe   :  { %512 = vmatmul.mubr.msk.f32.vlgmr.msra.gmra.mrb[0].mxu1 %vm66_vm0, %v438_v55 }
  0xff   :  { %514 = vmatprep.mubr.msk.f32.mxu1 %vm66_vm0, %v439_v56 }
 0x102   :  { %515 = vmatmul.mubr.msk.f32.gmra.mrb[2].mxu1 %vm66_vm0, %v440_v57 }
 0x103   :  { %528 = vmatprep.mubr.msk.f32.mxu1 %vm66_vm0, %v443_v59 }
 0x1d1   :  { %v513_v62 = vpop.f32.mrb[0].mxu1 }
 0x1d2   :  { %v288_v63 = vadd.f32 %v513_v62, %v192_v60  ;;  %v282_v0 = vpop.f32.mrb[1].mxu1 }
 0x1d3   :  { %v283_v1 = vadd.f32 %v282_v0, %v187_v61 }
 0x1d4   :  { %v306_v2 = vmul.f32 0.70710677, %v288_v63  ;;  %v302_v14 = vmul.f32 0.5, %v288_v63 }
 0x1d5   :  { %v305_v4 = vmul.f32 0.70710677, %v283_v1  ;;  %v516_v5 = vpop.f32.mrb[2].mxu1  ;;  %v301_v16 = vmul.f32 0.5, %v283_v1 }
 0x1d6   :  { %570 = verf.f32 %v306_v2  ;;  %v298_v7 = vadd.f32 %v516_v5, %v202_v3  ;;  %v292_v8 = vpop.f32.mrb[3].mxu1 }
 0x1d7   :  { %572 = verf.f32 %v305_v4  ;;  %v293_v9 = vadd.f32 %v292_v8, %v197_v6 }
 0x1d8   :  { %v308_v10 = vmul.f32 0.70710677, %v298_v7  ;;  %v304_v22 = vmul.f32 0.5, %v298_v7 }
 0x1d9   :  { %v307_v11 = vmul.f32 0.70710677, %v293_v9  ;;  %v303_v25 = vmul.f32 0.5, %v293_v9 }
 0x1da   :  { %574 = verf.f32 %v308_v10 }
 0x1db   :  { %576 = verf.f32 %v307_v11 }
 0x1e0   :  { %v571_v12 = vpop.eup %570 }
 0x1e1   :  { %v573_v13 = vpop.eup %572  ;;  %v314_v15 = vadd.f32 1.0, %v571_v12 }
 0x1e2   :  { %v313_v17 = vadd.f32 1.0, %v573_v13 }
 0x1e3   :  { %v318_v18 = vmul.f32 %v314_v15, %v302_v14 }
 0x1e4   :  { %v575_v19 = vpop.eup %574  ;;  %v317_v20 = vmul.f32 %v313_v17, %v301_v16 }
 0x1e5   :  { %v577_v21 = vpop.eup %576  ;;  %v316_v23 = vadd.f32 1.0, %v575_v19 }
 0x1e6   :  { %v547_v24 = vpack.c.bf16 %v318_v18, %v317_v20  ;;  %v315_v26 = vadd.f32 1.0, %v577_v21 }
 0x1e7   :  { %v320_v27 = vmul.f32 %v316_v23, %v304_v22 }
 0x1e8   :  { %v319_v28 = vmul.f32 %v315_v26, %v303_v25  ;;  %548 = vmatprep.subr.bf16.mxu0 %v547_v24  ;;  %555 = vmatprep.subr.bf16.mxu1 %v547_v24 }
 0x1e9   :  { %550 = vmatpush3.bf16.msra.mxu0 %v547_v24  ;;  %557 = vmatpush3.bf16.msra.mxu1 %v547_v24 }
 0x1ea   :  { %v551_v29 = vpack.c.bf16 %v320_v27, %v319_v28 }
 0x1ec   :  { %552 = vmatprep.subr.bf16.mxu0 %v551_v29  ;;  %556 = vmatprep.subr.bf16.mxu1 %v551_v29 }
 0x1ed   :  { %554 = vmatpush3.bf16.msra.mxu0 %v551_v29  ;;  %558 = vmatpush3.bf16.msra.mxu1 %v551_v29 }
 0x1f0   :  { %526 = vmatmul.mubr.msk.f32.vlgmr.msra.gmra.mrb[4].mxu0 %vm66_vm0, %v442_v30  ;;  %529 = vmatmul.mubr.msk.f32.vlgmr.msra.gmra.mrb[4].mxu1 %vm66_vm0, %v444_v31 }
 0x2c3   :  { %v527_v33 = vpop.f32.mrb[4].mxu0  ;;  %v530_v34 = vpop.f32.mrb[4].mxu1 }
 0x2c4   :  { %v416_v35 = vpop.f32.mrb[5].mxu0  ;;  %v425_v36 = vpop.f32.mrb[5].mxu1 }
 0x2c5   :  { %v417_v37 = vadd.f32 %v416_v35, %v324_v32 }
 0x2c7   :  { %432 = vst [vmem:[%s692_s3] sm:$0xff] %v417_v37 }

</bundles_post_ra>
